<compile_context>
chip_gen: v5e
topology: v5e:2x2
jax: 0.10.0
libtpu: 0.0.40
codegen_flags: <defaults>
</compile_context>

<pallas_src>
import functools

import jax
import jax.numpy as jnp
from jax import lax
from jax.experimental import pallas as pl
from jax.experimental.pallas import tpu as pltpu

_MIB = 1024 * 1024


def _round_up(n, m):
    return ((n + m - 1) // m) * m


def _cdiv(a, b):
    return (a + b - 1) // b


# --------------------------------------------------------------------------- #
# Kernel
# --------------------------------------------------------------------------- #
def _embed_to_latents_kernel(x_ref, w_ref, o_ref, *, compute_dtype):
    # x_ref: (tm, dim)            -- original dtype (e.g. f32) straight from HBM
    # w_ref: (dim, n_p)           -- pre-cast, pre-transposed, 128-lane padded
    # o_ref: (tm, n_p) block over a (batch, dim_latents) array (partial blocks masked)
    x = x_ref[...]
    if compute_dtype is not None and x.dtype != compute_dtype:
        x = x.astype(compute_dtype)   # VPU cast, hidden under the MXU
    lat = jnp.dot(x, w_ref[...], preferred_element_type=jnp.float32)  # (tm, n_p) f32

    # F.normalize(dim=-1): lat / max(||lat||, 1e-12) == lat * rsqrt(max(||lat||^2, 1e-24)).
    # Padded weight columns are zero -> they contribute 0 to the squared norm.
    sq = jnp.sum(lat * lat, axis=-1, keepdims=True)
    inv = lax.rsqrt(jnp.maximum(sq, 1e-24))           # EUP slot, keeps VALU free
    o_ref[...] = (lat * inv).astype(o_ref.dtype)


# --------------------------------------------------------------------------- #
# VMEM budgets & row-tile selection
# --------------------------------------------------------------------------- #
def _vmem_budgets(vmem_tile_budget=None, vmem_limit_bytes=None):
    """Generation-keyed VMEM tile budget and scoped-VMEM limit."""
    try:
        physical = int(pltpu.get_tpu_info().vmem_capacity_bytes)
    except Exception:
        physical = 64 * _MIB                     # conservative fallback (v7x-sized)
    if physical <= 64 * _MIB:                    # v7x-class: 64 MiB per TensorCore
        default_budget, default_limit = 36 * _MIB, 52 * _MIB
    else:                                        # v5e / v6e: 128 MiB
        default_budget, default_limit = 80 * _MIB, 96 * _MIB
    budget = default_budget if vmem_tile_budget is None else int(vmem_tile_budget)
    if vmem_limit_bytes is None:
        limit = min(physical - 8 * _MIB, max(default_limit, budget + 16 * _MIB))
    else:
        limit = int(vmem_limit_bytes)
    return budget, limit


def _choose_tm(batch, dim, n_p, x_itemsize, compute_itemsize, out_itemsize,
               w_itemsize, weight_single_buffered, vmem_tile_budget, row_mult):
    """Largest MXU-friendly row tile whose live VMEM footprint fits the budget."""
    w_bufs = 1 if weight_single_buffered else 2
    w_bytes = w_bufs * dim * n_p * w_itemsize
    per_row = (2 * dim * x_itemsize          # x input tile, double-buffered
               + dim * compute_itemsize      # in-kernel cast copy of the x tile
               + 2 * n_p * out_itemsize      # output tile, double-buffered
               + 2 * n_p * 4)                # f32 matmul result + epilogue temporary
    avail = vmem_tile_budget - w_bytes - 2 * _MIB     # headroom for internal scratch
    cap = max(int(avail // per_row), row_mult)
    if cap >= 256:
        tm = min((cap // 256) * 256, 1024)   # fill the 256-row systolic array
    else:
        tm = max((cap // row_mult) * row_mult, row_mult)
    # Never use a tile (much) larger than the batch itself.
    tm = min(tm, _round_up(batch, row_mult))
    # Keep >= 2 grid steps when batch allows it: lets ("parallel",) shard across
    # v7x's two TensorCores and gives the pipeline something to overlap.
    if _cdiv(batch, tm) == 1 and batch > 2 * row_mult:
        tm = max(_round_up(_cdiv(batch, 2), row_mult), row_mult)
    return tm


# --------------------------------------------------------------------------- #
# Weight preparation (hoist out of the per-call path; cache the result)
# --------------------------------------------------------------------------- #
def prepare_weight(weight, compute_dtype=jnp.bfloat16):
    """One-time weight prep: cast + transpose to canonical MXU [K, N] layout +
    pad dim_latents to a 128-lane multiple.  Call at parameter-load time and
    cache the result; embed_to_latents() below re-runs it per call only for
    convenience.

    weight: [dim_latents, dim]  (PyTorch nn.Linear layout, no bias)
    returns: [dim, round_up(dim_latents, 128)]
    """
    dim_latents, dim = weight.shape
    n_p = _round_up(dim_latents, 128)
    if compute_dtype is not None:
        weight = weight.astype(compute_dtype)
    w_t = weight.T                                       # [dim, dim_latents]
    if n_p != dim_latents:
        w_t = jnp.pad(w_t, ((0, 0), (0, n_p - dim_latents)))
    return w_t


# --------------------------------------------------------------------------- #
# Forward
# --------------------------------------------------------------------------- #
def embed_to_latents_prepared(x, w_prepped, dim_latents, *,
                              compute_dtype=jnp.bfloat16, tm=None,
                              vmem_tile_budget=None, vmem_limit_bytes=None):
    """Hot path: x [batch, dim], w_prepped from prepare_weight()."""
    batch, dim = x.shape
    dim_w, n_p = w_prepped.shape
    assert dim_w == dim, "prepared weight must be [dim, n_p]"
    assert n_p % 128 == 0 and n_p >= dim_latents

    out_dtype = x.dtype
    compute_itemsize = (jnp.dtype(compute_dtype).itemsize
                        if compute_dtype is not None else x.dtype.itemsize)
    # (8,128) packing for 32-bit, (16,128) for bf16, (32,128) for 8-bit operands.
    row_mult = max(8, 32 // max(compute_itemsize, 1))

    budget, limit = _vmem_budgets(vmem_tile_budget, vmem_limit_bytes)

    # Single-buffer the grid-resident weight when it is big enough to matter.
    # TODO(synk): for weights that do not fit VMEM at all, add a K (dim) grid
    # axis with an f32 accumulator; not needed at these sizes.
    w_bytes_single = dim * n_p * w_prepped.dtype.itemsize
    weight_single_buffered = w_bytes_single > 4 * _MIB

    if tm is None:
        tm = _choose_tm(batch, dim, n_p, x.dtype.itemsize, compute_itemsize,
                        jnp.dtype(out_dtype).itemsize, w_prepped.dtype.itemsize,
                        weight_single_buffered, budget, row_mult)
    assert tm % 8 == 0, "row tile must be a multiple of 8"

    w_spec_kwargs = {}
    if weight_single_buffered:
        # Constant index_map -> the weight block never changes; one buffer suffices.
        w_spec_kwargs["pipeline_mode"] = pl.Buffered(1)

    kernel = functools.partial(_embed_to_latents_kernel, compute_dtype=compute_dtype)

    # No physical batch pad and no output slice: the final row block (and the
    # final 128-lane output block when dim_latents % 128 != 0) is partial and its
    # stores are masked by Pallas.  Out-of-bounds input rows are junk but rows
    # are independent, so they never contaminate in-bounds outputs.
    out = pl.pallas_call(
        kernel,
        out_shape=jax.ShapeDtypeStruct((batch, dim_latents), out_dtype),
        grid_spec=pltpu.PrefetchScalarGridSpec(
            num_scalar_prefetch=0,
            grid=(_cdiv(batch, tm),),
            in_specs=[
                pl.BlockSpec((tm, dim), lambda i: (i, 0)),                 # x row tile
                pl.BlockSpec((dim, n_p), lambda i: (0, 0), **w_spec_kwargs),  # resident W
            ],
            out_specs=pl.BlockSpec((tm, n_p), lambda i: (i, 0)),
        ),
        compiler_params=pltpu.CompilerParams(
            dimension_semantics=("parallel",),   # batch axis shards across TCs (v7x)
            vmem_limit_bytes=int(limit),
        ),
    )(x, w_prepped)
    return out


def embed_to_latents(x, weight, *, compute_dtype=jnp.bfloat16, tm=None,
                     vmem_tile_budget=None, vmem_limit_bytes=None):
    """EmbedToLatents forward.

    x:      [..., dim]
    weight: [dim_latents, dim]   (PyTorch nn.Linear layout, no bias)

    NOTE: this convenience wrapper re-runs prepare_weight() each call; for the
    hot path, cache prepare_weight(weight) at parameter-load time and call
    embed_to_latents_prepared() directly.
    """
    dim_latents, dim = weight.shape
    assert x.shape[-1] == dim, "x last dim must match weight's dim"
    lead = x.shape[:-1]
    x2 = x.reshape((-1, dim))
    w_prepped = prepare_weight(weight, compute_dtype)
    out = embed_to_latents_prepared(
        x2, w_prepped, dim_latents, compute_dtype=compute_dtype, tm=tm,
        vmem_tile_budget=vmem_tile_budget, vmem_limit_bytes=vmem_limit_bytes)
    return out.reshape(lead + (dim_latents,))


def embed_to_latents_ref(x, weight):
    lat = jnp.dot(x.astype(jnp.float32), weight.astype(jnp.float32).T)
    norm = jnp.maximum(jnp.linalg.norm(lat, axis=-1, keepdims=True), 1e-12)
    return (lat / norm).astype(x.dtype)


if __name__ == "__main__":
    key = jax.random.PRNGKey(0)
    kx, kw, kx2, kw2 = jax.random.split(key, 4)

    # Aligned shapes, default bf16 MXU path (looser tolerance vs the f32 reference).
    batch, dim, dim_latents = 16, 64, 128
    x = jax.random.normal(kx, (batch, dim), dtype=jnp.float32)
    # nn.Linear(dim, dim_latents, bias=False): PyTorch weight layout [dim_latents, dim].
    weight = jax.random.normal(kw, (dim_latents, dim), dtype=jnp.float32) * 0.02

    out = jax.block_until_ready(embed_to_latents(x, weight))
    ref = embed_to_latents_ref(x, weight)
    assert out.shape == (batch, dim_latents)
    assert jnp.allclose(out, ref, atol=2e-2, rtol=2e-2)

    # Unaligned shapes (partial batch block + partial 128-lane output block),
    # f32 compute path checked tightly against the reference.
    batch2, dim2, dim_latents2 = 10, 48, 96
    x2 = jax.random.normal(kx2, (batch2, dim2), dtype=jnp.float32)
    weight2 = jax.random.normal(kw2, (dim_latents2, dim2), dtype=jnp.float32) * 0.02

    out2 = jax.block_until_ready(embed_to_latents(x2, weight2, compute_dtype=None))
    ref2 = embed_to_latents_ref(x2, weight2)
    assert out2.shape == (batch2, dim_latents2)
    assert jnp.allclose(out2, ref2, atol=1e-4, rtol=1e-4)

    # Same unaligned shapes through the default bf16 path.
    out3 = jax.block_until_ready(embed_to_latents(x2, weight2))
    assert out3.shape == (batch2, dim_latents2)
    assert jnp.allclose(out3, ref2, atol=2e-2, rtol=2e-2)

    print("KERNEL_OK")
</pallas_src>

<mosaic_0001>
module attributes {stable_mosaic.version = 11 : i64} {
  func.func @_embed_to_latents_kernel(%arg0: i32, %arg1: memref<16x64xf32, #tpu.memory_space<vmem>>, %arg2: memref<64x128xbf16, #tpu.memory_space<vmem>>, %arg3: memref<16x128xf32, #tpu.memory_space<vmem>>) attributes {dimension_semantics = [#tpu.dimension_semantics<parallel>], iteration_bounds = array<i64: 1>, scalar_prefetch = 0 : i64, scratch_operands = 0 : i64, tpu.core_type = #tpu.core_type<tc>, window_params = [{transform_indices = @transform_0, window_bounds = array<i64: 16, 64>}, {pipeline_mode = #tpu.pipeline_mode<synchronous>, transform_indices = @transform_1, window_bounds = array<i64: 64, 128>}, {transform_indices = @transform_2, window_bounds = array<i64: 16, 128>}]} {
    %c0 = arith.constant 0 : index
    %c0_0 = arith.constant 0 : index
    %0 = vector.load %arg1[%c0, %c0_0] : memref<16x64xf32, #tpu.memory_space<vmem>>, vector<16x64xf32>
    %1 = arith.truncf %0 : vector<16x64xf32> to vector<16x64xbf16>
    %c0_1 = arith.constant 0 : index
    %c0_2 = arith.constant 0 : index
    %2 = vector.load %arg2[%c0_1, %c0_2] : memref<64x128xbf16, #tpu.memory_space<vmem>>, vector<64x128xbf16>
    %cst = arith.constant dense<0.000000e+00> : vector<16x128xf32>
    %3 = tpu.matmul %1, %2, %cst {dimension_numbers = #tpu.dot_dimension_numbers<[1], [0], [0], [1], [0, 0, 1, 1], [], []>} : vector<16x64xbf16>, vector<64x128xbf16>, vector<16x128xf32> -> vector<16x128xf32>
    %4 = arith.mulf %3, %3 : vector<16x128xf32>
    %cst_3 = arith.constant dense<0.000000e+00> : vector<16xf32>
    %5 = vector.multi_reduction <add>, %4, %cst_3 [1] : vector<16x128xf32> to vector<16xf32>
    %6 = vector.shape_cast %5 : vector<16xf32> to vector<16x1xf32>
    %cst_4 = arith.constant 1.000000e-24 : f32
    %7 = vector.broadcast %cst_4 : f32 to vector<16x1xf32>
    %8 = arith.maximumf %6, %7 : vector<16x1xf32>
    %9 = math.rsqrt %8 : vector<16x1xf32>
    %10 = vector.broadcast %9 : vector<16x1xf32> to vector<16x128xf32>
    %11 = arith.mulf %3, %10 : vector<16x128xf32>
    %c0_5 = arith.constant 0 : index
    %c0_6 = arith.constant 0 : index
    %12 = vector.load %arg3[%c0_5, %c0_6] : memref<16x128xf32, #tpu.memory_space<vmem>>, vector<16x128xf32>
    tpu.vector_store %arg3[%c0_5, %c0_6], %11 {strides = array<i32>} : memref<16x128xf32, #tpu.memory_space<vmem>>, vector<16x128xf32>,
    return
  }
  func.func @transform_0(%arg0: i32) -> (i32, i32) {
    %c0_i32 = arith.constant 0 : i32
    %c0_i32_0 = arith.constant 0 : i32
    return %arg0, %c0_i32 : i32, i32
  }
  func.func @transform_1(%arg0: i32) -> (i32, i32) {
    %c0_i32 = arith.constant 0 : i32
    %c0_i32_0 = arith.constant 0 : i32
    %c0_i32_1 = arith.constant 0 : i32
    return %c0_i32, %c0_i32_0 : i32, i32
  }
  func.func @transform_2(%arg0: i32) -> (i32, i32) {
    %c0_i32 = arith.constant 0 : i32
    %c0_i32_0 = arith.constant 0 : i32
    return %arg0, %c0_i32 : i32, i32
  }
}

</mosaic_0001>

<bundles_post_ra>
// kernel: tpu_custom_call.1
= control target key start
LH: loop header
LB: loop body
LE: loop exit
PB: predicated region body
PF: predicated region fallthrough
CT: control target
= control target key end

     0   :  { %7 = vsyncpa [#allocation3], 0  ;;  %s297_s0 = inlined_call_operand.hbm [shape: f32[16,64], index: 0, kind: input, shape index: {}]   ;;  %s298_s1 = inlined_call_operand.hbm [shape: bf16[64,128], index: 1, kind: input, shape index: {}]   ;;  %s299_s2 = inlined_call_operand.hbm [shape: f32[16,128], index: 2, kind: output, shape index: {}]  }
   0x1   :  { %8 = vsyncpa [#allocation6], 0 }
   0x2   :  { %9 = vsyncpa [#allocation4], 0  ;;  %s14_s11 = sshll.u32 %s297_s0, 4  ;;  %s260_s12 = smov [#allocation2]   ;;  %s15_s11 = int_to_ptr.hbm [resolvable:$true] %s14_s11 }
   0x3   :  { %s16_s13 = sshll.u32 %s260_s12, 4  ;;  %s27_s16 = sshll.u32 %s298_s1, 4  ;;  %s17_s13 = int_to_ptr.vmem [resolvable:$true] %s16_s13  ;;  %s28_s16 = int_to_ptr.hbm [resolvable:$true] %s27_s16 }
   0x4   :  { %s261_s17 = smov 128   ;;  %s262_s18 = smov 8  }
   0x5   :  { %22 = dma.hbm_to_vmem [thread:$0]  %s15_s11, 256, %s17_s13, [#allocation3], %s261_s17, %s261_s17, %s262_s18  }
   0x6   :  { %s263_s19 = smov [#allocation5]   ;;  %s264_s21 = smov 64  }
   0x7   :  { %s29_s20 = sshll.u32 %s263_s19, 4  ;;  %s265_s0 = smov 4   ;;  %s30_s20 = int_to_ptr.vmem [resolvable:$true] %s29_s20 }
   0x8   :  { %35 = dma.hbm_to_vmem [thread:$0]  %s28_s16, 512, %s30_s20, [#allocation6], %s264_s21, %s264_s21, %s265_s0  }
   0x9   :  { %254 = dma.done.wait [#allocation3], 256  }
   0xa   :  { %255 = vsyncadd [#allocation3], 4294967040 }
   0xb   :  { %256 = dma.done.wait [#allocation6], 512  }
   0xc   :  { %257 = vsyncadd [#allocation6], 4294966784  ;;  %v170_v0 = vld [vmem:[#allocation5 + $0x18] sm:$0xff]  ;;  %v169_v1 = vld [vmem:[#allocation5 + $0x10] sm:$0xff]  ;;  %vm80_vm0 = vcmask 523264   ;;  %s266_s1 = smov [#allocation7]  }
   0xd   :  { %88 = vmatpush.bf16.msra.mxu0 %v170_v0  ;;  %v168_v2 = vld [vmem:[#allocation5 + $0x8] sm:$0xff]  ;;  %v167_v3 = vld [vmem:[#allocation5] sm:$0xff]  ;;  %v45_v4 = vld [vmem:[#allocation2] sm:$0xff]  ;;  %s134_s22 = sshll.u32 %s266_s1, 4  ;;  %s136_s25 = sshll.u32 %s299_s2, 4  ;;  %s135_s22 = int_to_ptr.vmem [resolvable:$true] %s134_s22  ;;  %s137_s25 = int_to_ptr.hbm [resolvable:$true] %s136_s25 }
   0xe   :  { %v46_v5 = vld [vmem:[#allocation2 + $0x8] sm:$0xff] }
   0xf   :  { %v47_v6 = vpack.c.bf16 %v46_v5, %v45_v4 }
  0x11   :  { %89 = vmatpush.bf16.msra.mxu0 %v169_v1 }
  0x15   :  { %90 = vmatpush.bf16.msra.mxu0 %v168_v2 }
  0x19   :  { %91 = vmatpush.bf16.msra.mxu0 %v167_v3 }
  0x1c   :  { %166 = vmatmul.msk.bf16.vlgmr.msra.gmra.mxu0 %vm80_vm0, %v47_v6 }
  0x99   :  { %v93_v7 = vpop.f32.mrf.mxu0 }
  0x9a   :  { %v98_v8 = vmul.f32 %v93_v7, %v93_v7 }
  0x9c   :  { %100 = vadd.xlane.f32.xlu0 %v98_v8 }
  0xa1   :  { %v95_v9 = vpop.f32.mrf.mxu0 }
  0xa2   :  { %v99_v10 = vmul.f32 %v95_v9, %v95_v9 }
  0xa4   :  { %102 = vadd.xlane.f32.xlu0 %v99_v10 }
 0x10f   :  { %v101_v11 = vpop.xlane.xlu0 %100 }
 0x110   :  { %v104_v12 = vmax.f32 %v101_v11, 1e-24 }
 0x112   :  { %178 = vrsqrt.f32 %v104_v12  ;;  %vm112_vm2 = vweird.f32 %v104_v12 }
 0x117   :  { %v103_v13 = vpop.xlane.xlu0 %102 }
 0x118   :  { %v179_v14 = vpop.eup %178  ;;  %v105_v15 = vmax.f32 %v103_v13, 1e-24 }
 0x119   :  { %v107_v16 = vmul.f32 %v179_v14, %v104_v12  ;;  %vm113_vm1 = vweird.f32 %v179_v14 }
 0x11a   :  { %180 = vrsqrt.f32 %v105_v15  ;;  %vm114_vm3 = vmor %vm112_vm2, %vm113_vm1  ;;  %vm122_vm5 = vweird.f32 %v105_v15 }
 0x11b   :  { %v108_v17 = vmul.f32 %v179_v14, %v107_v16 }
 0x11d   :  { %v109_v18 = vmul.f32 0.5, %v108_v17 }
 0x11f   :  { %v110_v19 = vsub.f32 1.5, %v109_v18 }
 0x120   :  { %v181_v20 = vpop.eup %180 }
 0x121   :  { %v111_v21 = vmul.f32 %v179_v14, %v110_v19  ;;  %v117_v22 = vmul.f32 %v181_v20, %v105_v15  ;;  %vm123_vm4 = vweird.f32 %v181_v20 }
 0x122   :  { %vm124_vm6 = vmor %vm122_vm5, %vm123_vm4 }
 0x123   :  { %v115_v23 = vsel %vm114_vm3, %v179_v14, %v111_v21  ;;  %v118_v24 = vmul.f32 %v181_v20, %v117_v22 }
 0x124   :  { %v126_v25 = vmul.f32 %v115_v23, %v93_v7 }
 0x125   :  { %v119_v26 = vmul.f32 0.5, %v118_v24 }
 0x126   :  { %128 = vst [vmem:[#allocation7] sm:$0xff] %v126_v25 }
 0x127   :  { %v120_v27 = vsub.f32 1.5, %v119_v26 }
 0x129   :  { %v121_v28 = vmul.f32 %v181_v20, %v120_v27 }
 0x12b   :  { %v125_v29 = vsel %vm124_vm6, %v181_v20, %v121_v28 }
 0x12c   :  { %v127_v30 = vmul.f32 %v125_v29, %v95_v9 }
 0x12e   :  { %129 = vst [vmem:[#allocation7 + $0x8] sm:$0xff] %v127_v30 }
 0x12f   :  { %142 = dma.vmem_to_hbm [thread:$0]  %s135_s22, 256, %s137_s25, [#allocation4], %s261_s17, %s261_s17, %s262_s18  }
 0x130   :  { %258 = dma.done.wait [#allocation4], 256  }
 0x131   :  { %259 = vsyncadd [#allocation4], 4294967040 }
 0x132   :  { %147 = vsyncpa [#allocation3], 1 }
 0x133   :  { %148 = vsyncpa [#allocation6], 1 }
 0x134   :  { %149 = vsyncpa [#allocation4], 1 }

</bundles_post_ra>
